<compile_context>
chip_gen: v7x
topology: tpu7x:2x2x1
jax: 0.10.0
libtpu: 0.0.40
codegen_flags: <defaults>
</compile_context>

<pallas_src>
import functools

import jax
import jax.numpy as jnp
from jax.experimental import pallas as pl
from jax.experimental.pallas import tpu as pltpu


def _round_up(x, m):
    return (x + m - 1) // m * m


# ----------------------------------------------------------------------------
# Glue: PyTorch-compatible unfold / fold (im2col / col2im) in plain JAX.
# For the non-overlapping case (pad == 0, stride == ps) these are pure
# reshape/transpose, avoiding the gather/scatter path entirely.
# ----------------------------------------------------------------------------
def _unfold(x, ps, pad, stride):
    """x: (B, C, H, W) -> (B, C*ps*ps, L) with torch.nn.functional.unfold layout."""
    B, C, H, W = x.shape
    if pad == 0 and stride == ps and H % ps == 0 and W % ps == 0:
        nh, nw = H // ps, W // ps
        p = x.reshape(B, C, nh, ps, nw, ps).transpose(0, 1, 3, 5, 2, 4)
        return p.reshape(B, C * ps * ps, nh * nw)
    xp = jnp.pad(x, ((0, 0), (0, 0), (pad, pad), (pad, pad)))
    Hp, Wp = H + 2 * pad, W + 2 * pad
    nh = (Hp - ps) // stride + 1
    nw = (Wp - ps) // stride + 1
    ih = (jnp.arange(nh) * stride)[:, None] + jnp.arange(ps)[None, :]
    iw = (jnp.arange(nw) * stride)[:, None] + jnp.arange(ps)[None, :]
    p = xp[:, :, ih[:, :, None, None], iw[None, None, :, :]]            # (B,C,nh,ps,nw,ps)
    p = p.transpose(0, 1, 3, 5, 2, 4)                                    # (B,C,kh,kw,nh,nw)
    return p.reshape(B, C * ps * ps, nh * nw)


def _fold(cols, out_size, ps, pad, stride):
    """cols: (B, C*ps*ps, L) -> (B, C, H, W) with torch.nn.functional.fold semantics."""
    B, CP, L = cols.shape
    C = CP // (ps * ps)
    H, W = out_size
    if pad == 0 and stride == ps and H % ps == 0 and W % ps == 0:
        nh, nw = H // ps, W // ps
        p = cols.reshape(B, C, ps, ps, nh, nw).transpose(0, 1, 4, 2, 5, 3)
        return p.reshape(B, C, H, W)
    Hp, Wp = H + 2 * pad, W + 2 * pad
    nh = (Hp - ps) // stride + 1
    nw = (Wp - ps) // stride + 1
    p = cols.reshape(B, C, ps, ps, nh, nw).transpose(0, 1, 4, 2, 5, 3)
    ih = (jnp.arange(nh) * stride)[:, None] + jnp.arange(ps)[None, :]
    iw = (jnp.arange(nw) * stride)[:, None] + jnp.arange(ps)[None, :]
    out = jnp.zeros((B, C, Hp, Wp), cols.dtype)
    out = out.at[:, :, ih[:, :, None, None], iw[None, None, :, :]].add(p)
    return out[:, :, pad:pad + H, pad:pad + W]


# ----------------------------------------------------------------------------
# Pallas kernel 1: fused q/k 1x1 conv (no bias).  Both inputs are read once
# (no concat), spatial pixels are lane-dense, and the channel reduction is a
# single MXU dot_general.
# ----------------------------------------------------------------------------
def _conv1x1_qk_kernel(x1_ref, x2_ref, w_ref, q_ref, k_ref):
    # x1_ref/x2_ref: (1, Cin, TP)   pixels lane-dense
    # w_ref        : (Cout, Cin)
    w = w_ref[...].astype(jnp.float32)
    dn = (((1,), (0,)), ((), ()))
    q_ref[0] = jax.lax.dot_general(
        w, x1_ref[0].astype(jnp.float32), dn,
        preferred_element_type=jnp.float32).astype(q_ref.dtype)
    k_ref[0] = jax.lax.dot_general(
        w, x2_ref[0].astype(jnp.float32), dn,
        preferred_element_type=jnp.float32).astype(k_ref.dtype)


def conv1x1_qk(x1, x2, w):
    """Fused 1x1 conv (no bias) of x1 and x2 with a shared weight.

    x1, x2: (b, Cin, P);  w: (Cout, Cin)  ->  (q, k) each (b, Cout, P).
    """
    b, Cin, P = x1.shape
    Cout = w.shape[0]
    # Pixel tile sized so each input block is ~2 MiB; always 128-lane aligned.
    tp = ((2 << 20) // (max(Cin, 1) * 4)) // 128 * 128
    tp = max(128, min(16384, tp))
    P_pad = _round_up(P, 128)
    if P_pad <= tp:
        tp = P_pad
    else:
        P_pad = _round_up(P, tp)
    if P_pad != P:
        x1 = jnp.pad(x1, ((0, 0), (0, 0), (0, P_pad - P)))
        x2 = jnp.pad(x2, ((0, 0), (0, 0), (0, P_pad - P)))
    q, k = pl.pallas_call(
        _conv1x1_qk_kernel,
        out_shape=[jax.ShapeDtypeStruct((b, Cout, P_pad), x1.dtype),
                   jax.ShapeDtypeStruct((b, Cout, P_pad), x2.dtype)],
        grid=(b, P_pad // tp),
        in_specs=[
            pl.BlockSpec((1, Cin, tp), lambda i, j: (i, 0, j)),
            pl.BlockSpec((1, Cin, tp), lambda i, j: (i, 0, j)),
            pl.BlockSpec((Cout, Cin), lambda i, j: (0, 0)),
        ],
        out_specs=[pl.BlockSpec((1, Cout, tp), lambda i, j: (i, 0, j)),
                   pl.BlockSpec((1, Cout, tp), lambda i, j: (i, 0, j))],
        compiler_params=pltpu.CompilerParams(
            dimension_semantics=("parallel", "parallel")),
    )(x1, x2, w)
    if P_pad != P:
        q = q[:, :, :P]
        k = k[:, :, :P]
    return q, k


# ----------------------------------------------------------------------------
# Pallas kernel 2 (phase 1): streaming hard-argmax over keys.
# Emits only the best key index per query; V never enters this kernel.
# ----------------------------------------------------------------------------
def _argmax_kernel(q_ref, kt_ref, kinv_ref, idx_ref, m_ref, bi_ref, *,
                   n_real, n_pad, qk_bf16):
    ki = pl.program_id(2)
    tk = kt_ref.shape[2]

    @pl.when(ki == 0)
    def _init():
        m_ref[...] = jnp.full(m_ref.shape, -jnp.inf, m_ref.dtype)
        bi_ref[...] = jnp.zeros(bi_ref.shape, bi_ref.dtype)

    q = q_ref[0]                                    # (TQ, Dq_pad)
    kt = kt_ref[0]                                  # (Dq_pad, TK) pre-transposed
    if qk_bf16:
        q = q.astype(jnp.bfloat16)
        kt = kt.astype(jnp.bfloat16)
    s = jax.lax.dot_general(q, kt, (((1,), (0,)), ((), ())),
                            preferred_element_type=jnp.float32)   # (TQ, TK)
    s = s * kinv_ref[0].astype(jnp.float32)         # per-key 1/||k|| column scale

    col = jax.lax.broadcasted_iota(jnp.int32, s.shape, 1)

    def update(scores):
        mt = jnp.max(scores, axis=-1, keepdims=True)                    # (TQ, 1)
        loc = jnp.min(jnp.where(scores >= mt, col, tk), axis=-1,
                      keepdims=True)                                     # first occurrence
        better = mt > m_ref[...]                     # strict '>' keeps first across tiles
        bi_ref[...] = jnp.where(better, loc + ki * tk, bi_ref[...])
        m_ref[...] = jnp.where(better, mt, m_ref[...])

    if n_pad != n_real:
        last = pl.num_programs(2) - 1

        @pl.when(ki != last)
        def _full_tile():
            update(s)

        @pl.when(ki == last)
        def _masked_tile():   # padded keys live only in the last key tile
            update(jnp.where(col + ki * tk < n_real, s, -jnp.inf))
    else:
        update(s)

    @pl.when(ki == pl.num_programs(2) - 1)
    def _fin():
        idx_ref[0] = bi_ref[...]


def _attn_tiles(N, Dq_pad):
    """Pick (N_pad, TQ, TK, vmem_limit_bytes) from a VMEM budget."""
    def est(tq, tk):
        # double-buffered q/kt/kinv/idx blocks + persistent scratch (f32/int32)
        return 2 * 4 * (tq * Dq_pad + Dq_pad * tk + tk + tq) + 8 * tq

    if N <= 512:
        n_pad = _round_up(N, 8)
        tq = tk = n_pad
    else:
        tq = 256
        tk = 1024 if N > 2048 else 256
        while tk > 256 and est(tq, tk) > 28 * 1024 * 1024:
            tk //= 2
        n_pad = _round_up(N, max(tq, tk))
    e = est(tq, tk)
    vmem = None
    if e > 12 * 1024 * 1024:
        # Only raise the scoped limit when the working set needs it; cap at
        # 40 MiB so the request is always safe on v7x (64 MiB physical VMEM).
        vmem = min(e + 16 * 1024 * 1024, 40 * 1024 * 1024)
    return n_pad, tq, tk, vmem


def attention_argmax(q, kt, *, qk_bf16=False):
    """q: (b, N, Dq), kt: (b, Dq, N) -> (b, N) int32 hard-argmax key index.

    Matches argmax_j cos_sim(q_i, k_j): the q normalization is a positive
    per-row scale (cannot change the argmax, so it is dropped) and the k
    normalization is applied as a per-key column scale on the scores.
    """
    b, N, Dq = q.shape
    Dq_pad = _round_up(Dq, 128)

    # Tiny per-key inverse L2 norm (torch F.normalize eps=1e-12 -> eps^2),
    # computed once instead of re-normalizing K for every query tile.
    kinv = jax.lax.rsqrt(
        jnp.maximum(jnp.sum(kt.astype(jnp.float32) ** 2, axis=1), 1e-24))   # (b, N)

    N_pad, TQ, TK, vmem = _attn_tiles(N, Dq_pad)

    # Zero feature padding does not change dot products; padded keys get
    # masked to -inf inside the kernel (last key tile only).
    q = jnp.pad(q, ((0, 0), (0, N_pad - N), (0, Dq_pad - Dq)))
    kt = jnp.pad(kt, ((0, 0), (0, Dq_pad - Dq), (0, N_pad - N)))
    kinv = jnp.pad(kinv, ((0, 0), (0, N_pad - N))).reshape(b, 1, N_pad)

    cp_kwargs = dict(dimension_semantics=("parallel", "parallel", "arbitrary"))
    if vmem is not None:
        cp_kwargs["vmem_limit_bytes"] = vmem

    kernel = functools.partial(_argmax_kernel, n_real=N, n_pad=N_pad,
                               qk_bf16=qk_bf16)
    # Grid = (q tiles, batch, key tiles): key axis is the streaming reduction;
    # the outermost parallel axis has many steps (better core splitting than
    # a tiny batch axis).
    # TODO(synk): consider pltpu.CORE_PARALLEL on the q-tile axis for v7x.
    idx = pl.pallas_call(
        kernel,
        out_shape=jax.ShapeDtypeStruct((b, N_pad, 1), jnp.int32),
        grid=(N_pad // TQ, b, N_pad // TK),
        in_specs=[
            pl.BlockSpec((1, TQ, Dq_pad), lambda qi, bi, ki: (bi, qi, 0)),
            pl.BlockSpec((1, Dq_pad, TK), lambda qi, bi, ki: (bi, 0, ki)),
            pl.BlockSpec((1, 1, TK), lambda qi, bi, ki: (bi, 0, ki)),
        ],
        out_specs=pl.BlockSpec((1, TQ, 1), lambda qi, bi, ki: (bi, qi, 0)),
        scratch_shapes=[
            pltpu.VMEM((TQ, 1), jnp.float32),   # running best score
            pltpu.VMEM((TQ, 1), jnp.int32),     # running best key index
        ],
        compiler_params=pltpu.CompilerParams(**cp_kwargs),
    )(q, kt, kinv)
    return idx[:, :N, 0]


# ----------------------------------------------------------------------------
# Pallas kernel 3 (phase 2): deferred row gather via scalar-prefetch indices.
# Each selected V row is DMA'd exactly once (single pass over the output).
# ----------------------------------------------------------------------------
def _gather_rows_kernel(idx_ref, v_ref, o_ref):
    del idx_ref                      # consumed by the index_map (scalar prefetch)
    o_ref[...] = v_ref[...]


def gather_rows(v_flat, flat_idx):
    """out[i, :] = v_flat[flat_idx[i], :]."""
    G = flat_idx.shape[0]
    D = v_flat.shape[1]
    # TODO(synk): batch several gathered rows per grid step (manual
    # make_async_copy from V kept in HBM via memory_space=pl.ANY) to amortize
    # the ~0.35us per-grid-step overhead when b*N is large.
    return pl.pallas_call(
        _gather_rows_kernel,
        out_shape=jax.ShapeDtypeStruct((G, D), v_flat.dtype),
        grid_spec=pltpu.PrefetchScalarGridSpec(
            num_scalar_prefetch=1,
            grid=(G,),
            in_specs=[pl.BlockSpec((1, D), lambda i, idx_ref: (idx_ref[i], 0))],
            out_specs=pl.BlockSpec((1, D), lambda i, idx_ref: (i, 0)),
        ),
    )(flat_idx, v_flat)


# ----------------------------------------------------------------------------
# Full CrossAttFA forward.
# ----------------------------------------------------------------------------
def cross_att_fa(x1, x2, x3, conv_w, *, ps, pad, stride, qk_bf16=False):
    b, c, ah, aw, h, w = x1.shape
    B = b * ah * aw
    c8 = conv_w.shape[0]
    P = ah * aw * h * w

    # A 1x1 conv is pointwise, so it commutes with the
    # 'b c ah aw h w -> (b ah aw) c h w' rearrange: run it on a pure reshape of
    # the raw 6-D tensors (no transpose, no concat) and transpose the 8x
    # smaller projected tensors afterwards.
    q6, k6 = conv1x1_qk(x1.reshape(b, c, P), x2.reshape(b, c, P), conv_w)
    q6 = q6.reshape(b, c8, ah, aw, h, w)
    k6 = k6.reshape(b, c8, ah, aw, h, w)

    def to_bchw(x):  # 'b c ah aw h w -> (b ah aw) c h w'
        cc = x.shape[1]
        return x.transpose(0, 2, 3, 1, 4, 5).reshape(x.shape[0] * ah * aw, cc, h, w)

    qc = _unfold(to_bchw(q6), ps, pad, stride)           # (B, c8*ps*ps, N)
    kc = _unfold(to_bchw(k6), ps, pad, stride)
    vc = _unfold(to_bchw(x3), ps, pad, stride)           # (B, c*ps*ps, N)
    in_p, N = vc.shape[1], vc.shape[2]

    def regroup(t):  # '(b ah aw) p n -> b n (ah aw p)'
        Pp = t.shape[1]
        return (t.reshape(b, ah * aw, Pp, N)
                 .transpose(0, 3, 1, 2)
                 .reshape(b, N, ah * aw * Pp))

    q = regroup(qc)                                      # (b, N, Dq)
    # K is consumed pre-transposed: 'b (ah aw p) n' is a pure reshape.
    kt = kc.reshape(b, ah * aw * kc.shape[1], N)         # (b, Dq, N)
    v = regroup(vc)                                      # (b, N, Dv)

    idx = attention_argmax(q, kt, qk_bf16=qk_bf16)       # (b, N) int32

    # Deferred hard gather of the selected V rows (single pass over V).
    Dv = ah * aw * in_p
    v_flat = v.reshape(b * N, Dv)
    flat_idx = (idx + (jnp.arange(b, dtype=jnp.int32) * N)[:, None]).reshape(b * N)
    out = gather_rows(v_flat, flat_idx).reshape(b, N, Dv)

    # 'b n (ah aw p) -> (b ah aw) p n'
    out = (out.reshape(b, N, ah * aw, in_p)
              .transpose(0, 2, 3, 1)
              .reshape(B, in_p, N))
    out = _fold(out, (h, w), ps, pad, stride)            # (B, c, h, w)
    # '(b ah aw) c h w -> b c ah aw h w'
    return out.reshape(b, ah, aw, c, h, w).transpose(0, 3, 1, 2, 4, 5)


# ----------------------------------------------------------------------------
# Pure-JAX reference (for self-check only) — full torch semantics.
# ----------------------------------------------------------------------------
def cross_att_fa_ref(x1, x2, x3, conv_w, *, ps, pad, stride):
    b, c, ah, aw, h, w = x1.shape
    B = b * ah * aw
    to_bchw = lambda x: x.transpose(0, 2, 3, 1, 4, 5).reshape(B, c, h, w)
    x1b, x2b, x3b = to_bchw(x1), to_bchw(x2), to_bchw(x3)
    q_conv = jnp.einsum('bchw,oc->bohw', x1b, conv_w)
    k_conv = jnp.einsum('bchw,oc->bohw', x2b, conv_w)
    qc, kc, vc = (_unfold(t, ps, pad, stride) for t in (q_conv, k_conv, x3b))
    in_p, N = vc.shape[1], vc.shape[2]
    regroup = lambda t: (t.reshape(b, ah * aw, t.shape[1], N)
                           .transpose(0, 3, 1, 2).reshape(b, N, -1))
    q, k, v = regroup(qc), regroup(kc), regroup(vc)
    qn = q / jnp.maximum(jnp.linalg.norm(q, axis=-1, keepdims=True), 1e-12)
    kn = k / jnp.maximum(jnp.linalg.norm(k, axis=-1, keepdims=True), 1e-12)
    attn = jnp.einsum('bnd,bmd->bnm', qn, kn)
    idx = jnp.argmax(attn, axis=-1)                                   # (b, N)
    out = jnp.take_along_axis(v, idx[:, :, None], axis=1)             # (b, N, Dv)
    out = (out.reshape(b, N, ah * aw, in_p).transpose(0, 2, 3, 1)
              .reshape(B, in_p, N))
    out = _fold(out, (h, w), ps, pad, stride)
    return out.reshape(b, ah, aw, c, h, w).transpose(0, 3, 1, 2, 4, 5)


if __name__ == "__main__":
    # Small deterministic config: nChannels=8, patch_size=4, padding=0, strides=4.
    b, c, ah, aw, h, w = 2, 8, 2, 2, 8, 8
    ps, pad, stride = 4, 0, 4

    key = jax.random.PRNGKey(0)
    k1, k2, k3, kw = jax.random.split(key, 4)
    x1 = jax.random.normal(k1, (b, c, ah, aw, h, w), dtype=jnp.float32)
    x2 = jax.random.normal(k2, (b, c, ah, aw, h, w), dtype=jnp.float32)
    x3 = jax.random.normal(k3, (b, c, ah, aw, h, w), dtype=jnp.float32)
    # Conv2d(c, c//8, 1, bias=False) weight (squeezed 1x1 spatial dims): (c//8, c)
    conv_w = 0.1 * jax.random.normal(kw, (c // 8, c), dtype=jnp.float32)

    out = cross_att_fa(x1, x2, x3, conv_w, ps=ps, pad=pad, stride=stride)
    out = jax.block_until_ready(out)
    assert out.shape == (b, c, ah, aw, h, w), out.shape

    ref = cross_att_fa_ref(x1, x2, x3, conv_w, ps=ps, pad=pad, stride=stride)
    assert jnp.allclose(out, ref, atol=1e-5, rtol=1e-5), \
        float(jnp.max(jnp.abs(out - ref)))

    print("KERNEL_OK")
</pallas_src>

<mosaic_0001>
module attributes {stable_mosaic.version = 11 : i64} {
  func.func @_conv1x1_qk_kernel(%arg0: i32, %arg1: i32, %arg2: memref<1x8x256xf32, #tpu.memory_space<vmem>>, %arg3: memref<1x8x256xf32, #tpu.memory_space<vmem>>, %arg4: memref<1x8xf32, #tpu.memory_space<vmem>>, %arg5: memref<1x1x256xf32, #tpu.memory_space<vmem>>, %arg6: memref<1x1x256xf32, #tpu.memory_space<vmem>>) attributes {dimension_semantics = [#tpu.dimension_semantics<parallel>, #tpu.dimension_semantics<parallel>], iteration_bounds = array<i64: 2, 1>, scalar_prefetch = 0 : i64, scratch_operands = 0 : i64, tpu.core_type = #tpu.core_type<tc>, window_params = [{transform_indices = @transform_0, window_bounds = array<i64: 1, 8, 256>}, {transform_indices = @transform_1, window_bounds = array<i64: 1, 8, 256>}, {pipeline_mode = #tpu.pipeline_mode<synchronous>, transform_indices = @transform_2, window_bounds = array<i64: 1, 8>}, {transform_indices = @transform_3, window_bounds = array<i64: 1, 1, 256>}, {transform_indices = @transform_4, window_bounds = array<i64: 1, 1, 256>}]} {
    %c0 = arith.constant 0 : index
    %c0_0 = arith.constant 0 : index
    %0 = vector.load %arg4[%c0, %c0_0] : memref<1x8xf32, #tpu.memory_space<vmem>>, vector<1x8xf32>
    %c0_1 = arith.constant 0 : index
    %c0_2 = arith.constant 0 : index
    %c0_3 = arith.constant 0 : index
    %1 = vector.load %arg2[%c0_1, %c0_2, %c0_3] : memref<1x8x256xf32, #tpu.memory_space<vmem>>, vector<1x8x256xf32>
    %2 = vector.shape_cast %1 : vector<1x8x256xf32> to vector<8x256xf32>
    %cst = arith.constant dense<0.000000e+00> : vector<1x256xf32>
    %3 = tpu.matmul %0, %2, %cst {dimension_numbers = #tpu.dot_dimension_numbers<[1], [0], [0], [1], [0, 0, 1, 1], [], []>} : vector<1x8xf32>, vector<8x256xf32>, vector<1x256xf32> -> vector<1x256xf32>
    %c0_4 = arith.constant 0 : index
    %c0_5 = arith.constant 0 : index
    %c0_6 = arith.constant 0 : index
    %4 = vector.load %arg5[%c0_4, %c0_5, %c0_6] : memref<1x1x256xf32, #tpu.memory_space<vmem>>, vector<1x1x256xf32>
    %5 = vector.shape_cast %4 : vector<1x1x256xf32> to vector<1x256xf32>
    %6 = vector.shape_cast %3 : vector<1x256xf32> to vector<1x1x256xf32>
    tpu.vector_store %arg5[%c0_4, %c0_5, %c0_6], %6 {strides = array<i32>} : memref<1x1x256xf32, #tpu.memory_space<vmem>>, vector<1x1x256xf32>,
    %c0_7 = arith.constant 0 : index
    %c0_8 = arith.constant 0 : index
    %c0_9 = arith.constant 0 : index
    %7 = vector.load %arg3[%c0_7, %c0_8, %c0_9] : memref<1x8x256xf32, #tpu.memory_space<vmem>>, vector<1x8x256xf32>
    %8 = vector.shape_cast %7 : vector<1x8x256xf32> to vector<8x256xf32>
    %cst_10 = arith.constant dense<0.000000e+00> : vector<1x256xf32>
    %9 = tpu.matmul %0, %8, %cst_10 {dimension_numbers = #tpu.dot_dimension_numbers<[1], [0], [0], [1], [0, 0, 1, 1], [], []>} : vector<1x8xf32>, vector<8x256xf32>, vector<1x256xf32> -> vector<1x256xf32>
    %c0_11 = arith.constant 0 : index
    %c0_12 = arith.constant 0 : index
    %c0_13 = arith.constant 0 : index
    %10 = vector.load %arg6[%c0_11, %c0_12, %c0_13] : memref<1x1x256xf32, #tpu.memory_space<vmem>>, vector<1x1x256xf32>
    %11 = vector.shape_cast %10 : vector<1x1x256xf32> to vector<1x256xf32>
    %12 = vector.shape_cast %9 : vector<1x256xf32> to vector<1x1x256xf32>
    tpu.vector_store %arg6[%c0_11, %c0_12, %c0_13], %12 {strides = array<i32>} : memref<1x1x256xf32, #tpu.memory_space<vmem>>, vector<1x1x256xf32>,
    return
  }
  func.func @transform_0(%arg0: i32, %arg1: i32) -> (i32, i32, i32) {
    %c0_i32 = arith.constant 0 : i32
    %c0_i32_0 = arith.constant 0 : i32
    return %arg0, %c0_i32, %arg1 : i32, i32, i32
  }
  func.func @transform_1(%arg0: i32, %arg1: i32) -> (i32, i32, i32) {
    %c0_i32 = arith.constant 0 : i32
    %c0_i32_0 = arith.constant 0 : i32
    return %arg0, %c0_i32, %arg1 : i32, i32, i32
  }
  func.func @transform_2(%arg0: i32, %arg1: i32) -> (i32, i32) {
    %c0_i32 = arith.constant 0 : i32
    %c0_i32_0 = arith.constant 0 : i32
    %c0_i32_1 = arith.constant 0 : i32
    return %c0_i32, %c0_i32_0 : i32, i32
  }
  func.func @transform_3(%arg0: i32, %arg1: i32) -> (i32, i32, i32) {
    %c0_i32 = arith.constant 0 : i32
    %c0_i32_0 = arith.constant 0 : i32
    return %arg0, %c0_i32, %arg1 : i32, i32, i32
  }
  func.func @transform_4(%arg0: i32, %arg1: i32) -> (i32, i32, i32) {
    %c0_i32 = arith.constant 0 : i32
    %c0_i32_0 = arith.constant 0 : i32
    return %arg0, %c0_i32, %arg1 : i32, i32, i32
  }
}

</mosaic_0001>

<bundles_post_ra>
// kernel: tpu_custom_call.1
= control target key start
LH: loop header
LB: loop body
LE: loop exit
PB: predicated region body
PF: predicated region fallthrough
CT: control target
= control target key end

     0   :  { %10 = vsyncpa [#allocation3], 0  ;;  %s1234_s0 = inlined_call_operand.hbm [shape: f32[2,8,256], index: 0, kind: input, shape index: {}]   ;;  %s1235_s1 = inlined_call_operand.hbm [shape: f32[2,8,256], index: 1, kind: input, shape index: {}]   ;;  %s1236_s2 = inlined_call_operand.vmem [shape: f32[1,8], index: 2, kind: input, shape index: {}]   ;;  %s1237_s3 = inlined_call_operand.hbm [shape: f32[2,1,256], index: 3, kind: output, shape index: {0}]   ;;  %s1238_s4 = inlined_call_operand.hbm [shape: f32[2,1,256], index: 4, kind: output, shape index: {1}]  }
   0x1   :  { %12 = vsyncpa [#allocation3 + $0x1], 0 }
   0x2   :  { %13 = vsyncpa [#allocation6], 0 }
   0x3   :  { %15 = vsyncpa [#allocation6 + $0x1], 0 }
   0x4   :  { %16 = vsyncpa [#allocation4], 0 }
   0x5   :  { %18 = vsyncpa [#allocation4 + $0x1], 0 }
   0x6   :  { %19 = vsyncpa [#allocation9], 0 }
   0x7   :  { %21 = vsyncpa [#allocation9 + $0x1], 0  ;;  %s981_s15 = smov 0   ;;  %s983_s16 = smov 0  }
   0x8   :  { %s985_s17 = smov 0   ;;  %s987_s18 = smov 0  }
   0x9   :  { %s989_s19 = smov 0   ;;  %s991_s20 = smov 0  }
   0xa LB: > { %s667_s21 = sadd.s32 4294967295, %s948_s20   ;;  %s668_s22 = sadd.s32 4294967294, %s948_s20   ;;  %s948_s20 = sphi %s991_s20, %s27_s20   ;;  %s944_s19 = sphi %s989_s19, %s1258_s19   ;;  %s940_s18 = sphi %s987_s18, %s1257_s18   ;;  %s936_s17 = sphi %s985_s17, %s1256_s17   ;;  %s932_s16 = sphi %s983_s16, %s1255_s16   ;;  %s928_s15 = sphi %s981_s15, %s1254_s15  }
   0xb   : > { %s39_s23 = sadd.s32 1, %s944_s19  ;;  %s48_s24 = sadd.s32 1, %s936_s17 }
   0xc   : > { %p41_p0 = scmp.ge.s32.totalorder %s39_s23, 2  ;;  %p55_p1 = scmp.ne.s32.totalorder %s936_s17, %s932_s16 }
   0xd   : > { %p56_p2 = scmp.eq.s32.totalorder %s948_s20, 0  ;;  %p61_p3 = scmp.ne.s32.totalorder %s932_s16, %s928_s15 }
   0xe   : > { %s1260_s23 = smov (%p41_p0, %s39_s23), 0  ;;  %p62_p5 = scmp.eq.s32.totalorder %s667_s21, 0 }
   0xf   : > { %p1022_p4 = por %p56_p2, %p55_p1  ;;  %s43_s26 = ssub.s32 %s944_s19, %s1260_s23 }
  0x10   : > { %p136_p6 = scmp.eq.s32.totalorder %s667_s21, 1  ;;  %p46_p7 = scmp.eq.s32.totalorder %s43_s26, 0 }
  0x11   : > { %p1028_p8 = por %p62_p5, %p61_p3  ;;  %p142_p10 = scmp.eq.s32.totalorder %s668_s22, 1 }
  0x12   : > { %p1032_p9 = por %p136_p6, %p55_p1  ;;  %p718_p13 = scmp.lt.s32.totalorder %s948_s20, 2 }
  0x13   : > { %s1242_s27 = scalar_select %p1028_p8, 1, 0 }
  0x14   : > { %s1243_s28 = scalar_select %p1032_p9, 1, 0 }
  0x15   : > { %s1037_s29 = scalar_select %p46_p7, %s936_s17, %s48_s24  }
  0x16   : > { %p1039_p11 = por %p142_p10, %p61_p3  ;;  %s1046_s5 = sand.u32 1, %s936_s17  }
  0x17   : > { %s671_s6 = sshll.u32 %s1046_s5, 4  ;;  %s692_s7 = sshll.u32 %s944_s19, 8 }
  0x18   : > { %s1244_s30 = scalar_select %p1039_p11, 1, 0 }
  0x19   : > { %s1055_s10 = scalar_lea.hbm %s1234_s0, %s692_s7  ;;  %s197_s11 = scalar_lea.vmem [#allocation2], %s671_s6 }
  0x1a   : > { %s207_s12 = sshll.u32 %s197_s11, 4  ;;  %p1063_p0 = pnand %p718_p13, %p1022_p4  ;;  %s1059_s12 = int_to_ptr.vmem [resolvable:$true] %s207_s12 }
  0x1b   : > { %s194_s14 = scalar_lea.sflag [#allocation3], %s1046_s5  ;;  %s770_s21 = scalar_lea.hbm %s1055_s10, 256 }
  0x1c   : > { %p771_p3 = scmp.ne.s32.totalorder %s1055_s10, %s770_s21  ;;  %p772_p5 = pneg %p1063_p0 }
  0x1d   : > { %s775_s25 = scalar_lea.hbm %s1234_s0, 512  ;;  %p776_p4 = scmp.lt.u32.totalorder %s1055_s10, %s1234_s0 }
  0x1e   : > { %p773_p6 = pnand %p772_p5, %p771_p3  ;;  %p777_p10 = scmp.lt.u32.totalorder %s775_s25, %s770_s21 }
  0x1f   : > { %p779_p12 = scmp.lt.u32.totalorder %s770_s21, %s1055_s10 }
  0x20   : > { %p774_p7 = pneg %p773_p6  ;;  %p778_p13 = por %p777_p10, %p776_p4 }
  0x22   : > { %p780_p1 = por %p779_p12, %p778_p13 }
  0x24   : > { %p781_p2 = pnand %p780_p1, %p774_p7 }
  0x26   : > { %784 = shalt.err (!%p781_p2)
}
  0x27   : > { %s785_s9 = scalar_lea.vmem %s1059_s12, 256  ;;  %s950_s11 = smov [#allocation2]  }
  0x28   : > { %p786_p3 = scmp.ne.s32.totalorder %s1059_s12, %s785_s9  ;;  %s790_s22 = sshll.u32 %s950_s11, 4  ;;  %s791_s22 = int_to_ptr.vmem [resolvable:$false] %s790_s22 }
  0x29   : > { %s792_s24 = scalar_lea.vmem %s791_s22, 512  ;;  %p793_p9 = scmp.lt.s32.totalorder %s1059_s12, %s791_s22 }
  0x2a   : > { %p788_p6 = pnand %p786_p3, %p772_p5  ;;  %p794_p4 = scmp.lt.s32.totalorder %s792_s24, %s785_s9 }
  0x2c   : > { %p789_p11 = pneg %p788_p6  ;;  %p795_p10 = por %p794_p4, %p793_p9 }
  0x2e   : > { %p796_p12 = pnand %p795_p10, %p789_p11 }
  0x30   : > { %799 = shalt.err (!%p796_p12)
}
  0x31   : > { %707 = dma.hbm_to_vmem [thread:$0]  (!%p1063_p0), %s1055_s10, 256, %s1059_s12, %s194_s14  }
  0x32   : > { %p1246_p1 = scmp.lt.s32.totalorder %s948_s20, 3  ;;  %p1247_p2 = scmp.ge.s32.totalorder %s948_s20, 1 }
  0x33   : > { %s1108_s8 = scalar_lea.hbm %s1235_s1, %s692_s7  ;;  %s218_s9 = scalar_lea.vmem [#allocation5], %s671_s6 }
  0x34   : > { %p1099_p7 = pnand %p1247_p2, %p1246_p1  ;;  %s228_s11 = sshll.u32 %s218_s9, 4  ;;  %s229_s11 = int_to_ptr.vmem [resolvable:$true] %s228_s11 }
  0x35   : > { %s215_s10 = scalar_lea.sflag [#allocation6], %s1046_s5  ;;  %s800_s12 = scalar_lea.hbm %s1108_s8, 256 }
  0x36   : > { %s1248_s21 = scalar_select %p1099_p7, 1, 0 }
  0x37   : > { %p801_p9 = scmp.ne.s32.totalorder %s1108_s8, %s800_s12  ;;  %s805_s7 = scalar_lea.hbm %s1235_s1, 512 }
  0x38   : > { %p806_p3 = scmp.lt.u32.totalorder %s1108_s8, %s1235_s1  ;;  %p807_p6 = scmp.lt.u32.totalorder %s805_s7, %s800_s12 }
  0x39   : > { %p803_p11 = pnand %p801_p9, %p772_p5  ;;  %p809_p10 = scmp.lt.u32.totalorder %s800_s12, %s1108_s8 }
  0x3a   : > { %p808_p4 = por %p807_p6, %p806_p3 }
  0x3b   : > { %p804_p13 = pneg %p803_p11 }
  0x3c   : > { %p810_p12 = por %p809_p10, %p808_p4 }
  0x3e   : > { %p811_p1 = pnand %p810_p12, %p804_p13 }
  0x40   : > { %814 = shalt.err (!%p811_p1)
}
  0x41   : > { %s815_s5 = scalar_lea.vmem %s229_s11, 256  ;;  %s951_s6 = smov [#allocation5]  }
  0x42   : > { %p816_p2 = scmp.ne.s32.totalorder %s229_s11, %s815_s5  ;;  %s820_s26 = sshll.u32 %s951_s6, 4  ;;  %s821_s26 = int_to_ptr.vmem [resolvable:$false] %s820_s26 }
  0x43   : > { %s822_s9 = scalar_lea.vmem %s821_s26, 512  ;;  %p823_p8 = scmp.lt.s32.totalorder %s229_s11, %s821_s26 }
  0x44   : > { %p818_p9 = pnand %p816_p2, %p772_p5  ;;  %p824_p7 = scmp.lt.s32.totalorder %s822_s9, %s815_s5 }
  0x46   : > { %p819_p11 = pneg %p818_p9  ;;  %p825_p3 = por %p824_p7, %p823_p8 }
  0x48   : > { %p826_p6 = pnand %p825_p3, %p819_p11 }
  0x4a   : > { %829 = shalt.err (!%p826_p6)
}
  0x4b   : > { %710 = dma.hbm_to_vmem [thread:$0]  (!%p1063_p0), %s1108_s8, 256, %s229_s11, %s215_s10  }
  0x4c   : > { %p1249_p13 = scmp.ne.s32.totalorder %s1248_s21, 0 }
  0x4d   : > { %s1135_s12 = sand.u32 (!%p1249_p13), 1, %s932_s16   ;;  %p1250_p5 = scmp.ne.s32.totalorder (!%p1249_p13), %s1242_s27, 0 }
  0x4e   : > { %237 = sbr.rel (%p1249_p13) target bundleno = 348 (0x15c), region = 32  ;;  %s678_s14 = sshll.u32 (!%p1249_p13), %s1135_s12, 4 }
  0x4f   : > { %s240_s22 = scalar_lea.sflag (!%p1249_p13), [#allocation3], %s1135_s12  ;;  %s243_s7 = scalar_lea.vmem (!%p1249_p13), [#allocation2], %s678_s14 }
  0x55   : > { %911 = dma.done.wait (%p1250_p5), %s240_s22, 256  }
  0x56   : > { %913 = vsyncadd (%p1250_p5), %s240_s22, 4294967040  ;;  %s249_s13 = scalar_lea.sflag [#allocation6], %s1135_s12  ;;  %s252_s8 = scalar_lea.vmem [#allocation5], %s678_s14 }
  0x57   : > { %915 = dma.done.wait (%p1250_p5), %s249_s13, 256  }
  0x58   : > { %917 = vsyncadd (%p1250_p5), %s249_s13, 4294967040  ;;  %v952_v0 = vmov 0.0   ;;  %v293_v1 = vld [vmem:[%s243_s7 + $0x8] sm:$0xff]  ;;  %v292_v3 = vld [vmem:[%s243_s7] sm:$0xff]  ;;  %vm294_vm0 = vcmask 64512   ;;  %v375_v8 = vlaneseq  ;;  %s680_s27 = sshll.u32 %s1135_s12, 1 }
  0x59   : > { %362 = vmatprep.mubr.f32.mxu0 %v952_v0  ;;  %458 = vmatprep.mubr.f32.mxu1 %v952_v0  ;;  %v393_v2 = vld [vmem:[%s252_s8 + $0x8] sm:$0xff]  ;;  %v392_v4 = vld [vmem:[%s252_s8] sm:$0xff]  ;;  %v953_v6 = vmov 1966171168   ;;  %s694_s10 = sshll.u32 %s940_s18, 5  ;;  %s279_s24 = scalar_lea.vmem [#allocation7], %s680_s27 }
  0x5a   : > { %298 = vmatprep.subr.mxu0 %v293_v1  ;;  %394 = vmatprep.subr.mxu1 %v393_v2  ;;  %v291_v5 = vld [vmem:[%s1236_s2] sm:$0x1]  ;;  %v373_v7 = vunpack.c.l.s4 %v953_v6  ;;  %v376_v10 = vshrl.u32 %v375_v8, 7  ;;  %s506_s25 = sshll.u32 %s279_s24, 4  ;;  %s286_s5 = scalar_lea.vmem [#allocation8], %s680_s27  ;;  %vm389_vm1 = vcmp.lt.s32.totalorder %v375_v8, 256  ;;  %s1158_s25 = int_to_ptr.vmem [resolvable:$true] %s506_s25 }
  0x5b   : > { %299 = vmatpush1.msra.mxu0 %v292_v3  ;;  %395 = vmatpush1.msra.mxu1 %v392_v4  ;;  %s522_s6 = sshll.u32 %s286_s5, 4  ;;  %s1156_s14 = scalar_lea.hbm %s1237_s3, %s694_s10  ;;  %s1165_s6 = int_to_ptr.vmem [resolvable:$true] %s522_s6 }
  0x5c   : > { %682 = vmatmul.mubr.msk.f32.vlgmr.msra.gmra.mrb[0].mxu0 %vm294_vm0, %v291_v5  ;;  %683 = vmatmul.mubr.msk.f32.vlgmr.msra.gmra.mrb[0].mxu1 %vm294_vm0, %v291_v5  ;;  %v374_v9 = vunpack.c.0.s8 %v373_v7  ;;  %s1163_s7 = scalar_lea.hbm %s1238_s4, %s694_s10  ;;  %s485_s13 = scalar_lea.sflag [#allocation4], %s1135_s12 }
  0x5d   : > { %s830_s8 = scalar_lea.vmem %s1158_s25, 32  ;;  %p1251_p0 = scmp.ne.s32.totalorder %s1243_s28, 0 }
  0x5e   : > { %v377_v13 = vsub.s32 %v374_v9, %v376_v10  ;;  %p831_p8 = scmp.ne.s32.totalorder %s1158_s25, %s830_s8  ;;  %s954_s21 = smov [#allocation7]  }
  0x5f   : > { %s834_s11 = sshll.u32 %s954_s21, 4  ;;  %s835_s11 = int_to_ptr.vmem [resolvable:$false] %s834_s11 }
  0x60   : > { %p832_p7 = pnand %p831_p8, %p1251_p0  ;;  %s836_s27 = scalar_lea.vmem %s835_s11, 64 }
  0x61   : > { %p837_p10 = scmp.lt.s32.totalorder %s1158_s25, %s835_s11  ;;  %p838_p12 = scmp.lt.s32.totalorder %s836_s27, %s830_s8 }
  0x62   : > { %p833_p4 = pneg %p832_p7 }
  0x63   : > { %p839_p1 = por %p838_p12, %p837_p10 }
  0x65   : > { %p840_p2 = pnand %p839_p1, %p833_p4 }
 0x12f   : > { %v364_v11 = vpop.f32.mrb[0].mxu0  ;;  %v460_v12 = vpop.f32.mrb[0].mxu1 }
 0x130   : > { %v366_v14 = vpop.f32.mrb[1].mxu0  ;;  %v462_v15 = vpop.f32.mrb[1].mxu1 }
 0x131   : > { %v371_v16 = vcombine.low %v364_v11, %v366_v14  ;;  %v467_v17 = vcombine.low %v460_v12, %v462_v15 }
 0x133   : > { %v378_v18 = vrot.slane %v371_v16, %v377_v13  ;;  %v474_v19 = vrot.slane %v467_v17, %v377_v13 }
 0x135   : > { %v385_v20 = vrot.slane %v378_v18, %v377_v13  ;;  %v481_v21 = vrot.slane %v474_v19, %v377_v13 }
 0x137   : > { %391 = vst.msk [vmem:[%s279_s24] sm:$0x3] %vm389_vm1, %v385_v20  ;;  %483 = vst.msk [vmem:[%s286_s5] sm:$0x3] %vm389_vm1, %v481_v21 }
 0x138   : > { %843 = shalt.err (!%p840_p2)
}
 0x139   : > { %s844_s10 = scalar_lea.hbm %s1156_s14, 32  ;;  %s848_s26 = scalar_lea.hbm %s1237_s3, 64 }
 0x13a   : > { %p845_p9 = scmp.ne.s32.totalorder %s1156_s14, %s844_s10  ;;  %p849_p6 = scmp.lt.u32.totalorder %s1156_s14, %s1237_s3 }
 0x13b   : > { %p850_p13 = scmp.lt.u32.totalorder %s848_s26, %s844_s10  ;;  %p852_p8 = scmp.lt.u32.totalorder %s844_s10, %s1156_s14 }
 0x13c   : > { %p846_p11 = pnand %p845_p9, %p1251_p0 }
 0x13d   : > { %p851_p5 = por %p850_p13, %p849_p6 }
 0x13e   : > { %p847_p3 = pneg %p846_p11 }
 0x13f   : > { %p853_p7 = por %p852_p8, %p851_p5 }
 0x141   : > { %p854_p4 = pnand %p853_p7, %p847_p3 }
 0x143   : > { %857 = shalt.err (!%p854_p4)
}
 0x144   : > { %700 = dma.vmem_to_hbm [thread:$0]  (%p1251_p0), %s1158_s25, 32, %s1156_s14, %s485_s13  }
 0x145   : > { %s490_s18 = scalar_lea.sflag [#allocation9], %s1135_s12  ;;  %s858_s8 = scalar_lea.vmem %s1165_s6, 32 }
 0x146   : > { %p859_p10 = scmp.ne.s32.totalorder %s1165_s6, %s858_s8  ;;  %s955_s21 = smov [#allocation8]  }
 0x147   : > { %s862_s11 = sshll.u32 %s955_s21, 4  ;;  %s863_s11 = int_to_ptr.vmem [resolvable:$false] %s862_s11 }
 0x148   : > { %p860_p12 = pnand %p859_p10, %p1251_p0  ;;  %s864_s27 = scalar_lea.vmem %s863_s11, 64 }
 0x149   : > { %p865_p2 = scmp.lt.s32.totalorder %s1165_s6, %s863_s11  ;;  %p866_p9 = scmp.lt.s32.totalorder %s864_s27, %s858_s8 }
 0x14a   : > { %p861_p1 = pneg %p860_p12 }
 0x14b   : > { %p867_p11 = por %p866_p9, %p865_p2 }
 0x14d   : > { %p868_p3 = pnand %p867_p11, %p861_p1 }
 0x14f   : > { %871 = shalt.err (!%p868_p3)
}
 0x150   : > { %s872_s12 = scalar_lea.hbm %s1163_s7, 32  ;;  %s876_s13 = scalar_lea.hbm %s1238_s4, 64 }
 0x151   : > { %p873_p6 = scmp.ne.s32.totalorder %s1163_s7, %s872_s12  ;;  %p877_p8 = scmp.lt.u32.totalorder %s1163_s7, %s1238_s4 }
 0x152   : > { %p878_p7 = scmp.lt.u32.totalorder %s876_s13, %s872_s12  ;;  %p880_p10 = scmp.lt.u32.totalorder %s872_s12, %s1163_s7 }
 0x153   : > { %p874_p13 = pnand %p873_p6, %p1251_p0 }
 0x154   : > { %p879_p4 = por %p878_p7, %p877_p8 }
 0x155   : > { %p875_p5 = pneg %p874_p13 }
 0x156   : > { %p881_p12 = por %p880_p10, %p879_p4 }
 0x158   : > { %p882_p1 = pnand %p881_p12, %p875_p5 }
 0x15a   : > { %885 = shalt.err (!%p882_p1)
}
 0x15b   : > { %701 = dma.vmem_to_hbm [thread:$0]  (%p1251_p0), %s1165_s6, 32, %s1163_s7, %s490_s18  }
 0x15c PF: > { %s534_s5 = sand.u32 1, %s928_s15   ;;  %p1252_p2 = scmp.ne.s32.totalorder %s1244_s30, 0 }
 0x15d   : > { %p1253_p9 = scmp.ge.s32.totalorder %s948_s20, 2  ;;  %s535_s26 = scalar_lea.sflag [#allocation4], %s534_s5 }
 0x15f   : > { %p712_p11 = pnand %p1253_p9, %p1252_p2 }
 0x161   : > { %919 = dma.done.wait (!%p712_p11), %s535_s26, 32  }
 0x162   : > { %921 = vsyncadd (!%p712_p11), %s535_s26, 4294967264  ;;  %s544_s9 = scalar_lea.sflag [#allocation9], %s534_s5 }
 0x163   : > { %923 = dma.done.wait (!%p712_p11), %s544_s9, 32  }
 0x164   : > { %925 = vsyncadd (!%p712_p11), %s544_s9, 4294967264  ;;  %s27_s20 = sadd.s32 1, %s948_s20   ;;  %s1254_s15 = smov %s932_s16 }
 0x165   : > { %p24_p3 = scmp.ge.s32.totalorder %s27_s20, 4   ;;  %s1255_s16 = smov %s936_s17 }
 0x166   : > { %s1256_s17 = smov %s1037_s29  ;;  %s1257_s18 = smov %s944_s19 }
 0x167   : > { %s1258_s19 = smov %s1260_s23  ;;  %26 = sbr.rel (!%p24_p3) target bundleno = 10 (0xa), region = 107 }
 0x16e   :  { %549 = vsyncpa [#allocation3], 1 }
 0x16f   :  { %551 = vsyncpa [#allocation3 + $0x1], 1 }
 0x170   :  { %552 = vsyncpa [#allocation6], 1 }
 0x171   :  { %554 = vsyncpa [#allocation6 + $0x1], 1 }
 0x172   :  { %555 = vsyncpa [#allocation4], 1 }
 0x173   :  { %557 = vsyncpa [#allocation4 + $0x1], 1 }
 0x174   :  { %558 = vsyncpa [#allocation9], 1 }
 0x175   :  { %560 = vsyncpa [#allocation9 + $0x1], 1 }

</bundles_post_ra>
